<compile_context>
chip_gen: v7x
topology: tpu7x:2x2x1
jax: 0.10.0
libtpu: 0.0.40
codegen_flags: <defaults>
</compile_context>

<pallas_src>
import functools

import jax
import jax.numpy as jnp
from jax.experimental import pallas as pl
from jax.experimental.pallas import tpu as pltpu


VMEM_LIMIT_BYTES = 32 * 1024 * 1024  # safe on v5e (128 MiB), v6e (128), v7x (64)


# ----------------------------- Linear kernels ------------------------------ #

def _matmul_kernel(x_ref, w_ref, o_ref, *, mxu_dtype):
    # y = x @ W (no bias) — f32 accumulation regardless of operand dtype.
    o_ref[...] = jnp.dot(
        x_ref[...].astype(mxu_dtype), w_ref[...].astype(mxu_dtype),
        preferred_element_type=jnp.float32).astype(o_ref.dtype)


def _matmul_bias_kernel(x_ref, w_ref, b_ref, o_ref, *, mxu_dtype):
    acc = jnp.dot(
        x_ref[...].astype(mxu_dtype), w_ref[...].astype(mxu_dtype),
        preferred_element_type=jnp.float32)
    o_ref[...] = (acc + b_ref[...]).astype(o_ref.dtype)


def linear(x2d, w, b=None, *, tile_m=None, mxu_dtype=jnp.float32):
    """x2d: (M, K) @ w: (K, Nout) [+ b: (Nout,)] -> (M, Nout)."""
    M, K = x2d.shape
    K2, Nout = w.shape
    assert K == K2
    if tile_m is None:
        tile_m = min(M, 512)          # big-but-bounded row tile; W stays resident
    grid = (pl.cdiv(M, tile_m),)

    x_spec = pl.BlockSpec((tile_m, K), lambda i: (i, 0))
    w_spec = pl.BlockSpec((K, Nout), lambda i: (0, 0))      # resident across grid
    o_spec = pl.BlockSpec((tile_m, Nout), lambda i: (i, 0))
    cparams = pltpu.CompilerParams(
        dimension_semantics=("parallel",),
        vmem_limit_bytes=VMEM_LIMIT_BYTES)

    if b is None:
        return pl.pallas_call(
            functools.partial(_matmul_kernel, mxu_dtype=mxu_dtype),
            out_shape=jax.ShapeDtypeStruct((M, Nout), x2d.dtype),
            grid_spec=pltpu.PrefetchScalarGridSpec(
                num_scalar_prefetch=0, grid=grid,
                in_specs=[x_spec, w_spec], out_specs=o_spec),
            compiler_params=cparams,
        )(x2d, w)

    return pl.pallas_call(
        functools.partial(_matmul_bias_kernel, mxu_dtype=mxu_dtype),
        out_shape=jax.ShapeDtypeStruct((M, Nout), x2d.dtype),
        grid_spec=pltpu.PrefetchScalarGridSpec(
            num_scalar_prefetch=0, grid=grid,
            in_specs=[x_spec, w_spec, pl.BlockSpec((1, Nout), lambda i: (0, 0))],
            out_specs=o_spec),
        compiler_params=cparams,
    )(x2d, w, b.reshape(1, Nout))


# --------------------------- Flash attention kernel ------------------------- #

def _flash_attention_kernel(q_ref, k_ref, v_ref, b_ref, o_ref,
                            m_sc, l_sc, acc_sc, *, scale, mxu_dtype):
    # Blocks: q (tq, H, hd), k/v (tk, H, hd), bias (H, tq, tk), out (tq, H*hd).
    H, tq, hd = acc_sc.shape
    kv = pl.program_id(2)

    @pl.when(kv == 0)
    def _init():
        m_sc[...] = jnp.full_like(m_sc, -jnp.inf)
        l_sc[...] = jnp.zeros_like(l_sc)
        acc_sc[...] = jnp.zeros_like(acc_sc)

    # Fold the softmax scale into q once (tq*H*hd mults instead of H*tq*tk).
    q_all = q_ref[...].astype(jnp.float32) * scale      # (tq, H, hd)
    k_all = k_ref[...]                                  # (tk, H, hd)
    v_all = v_ref[...]                                  # (tk, H, hd)
    bias = b_ref[...]                                   # (H, tq, tk) f32

    for h in range(H):                                  # static unroll (H is small)
        q_h = q_all[:, h, :].astype(mxu_dtype)          # (tq, hd)
        k_h = k_all[:, h, :].astype(mxu_dtype)          # (tk, hd)
        v_h = v_all[:, h, :].astype(mxu_dtype)          # (tk, hd)

        # Contract head_dim of q and k directly on the MXU (no k.T / XLU pass).
        s = jax.lax.dot_general(
            q_h, k_h, (((1,), (1,)), ((), ())),
            preferred_element_type=jnp.float32)         # (tq, tk)
        s = s + bias[h]

        m_prev = m_sc[h]                                # (tq, 1)
        m_new = jnp.maximum(m_prev, jnp.max(s, axis=-1, keepdims=True))
        alpha = jnp.exp(m_prev - m_new)
        p = jnp.exp(s - m_new)                          # (tq, tk) f32 softmax math
        l_sc[h] = alpha * l_sc[h] + jnp.sum(p, axis=-1, keepdims=True)
        acc_sc[h] = alpha * acc_sc[h] + jnp.dot(
            p.astype(mxu_dtype), v_h, preferred_element_type=jnp.float32)
        m_sc[h] = m_new

    @pl.when(kv == pl.num_programs(2) - 1)
    def _finalize():
        for h in range(H):
            # Exact reciprocal keeps bit-level agreement with the reference;
            # approx=True would move the divide to the EUP slot.
            inv = pl.reciprocal(l_sc[h], approx=False)  # (tq, 1)
            o_ref[:, h * hd:(h + 1) * hd] = (acc_sc[h] * inv).astype(o_ref.dtype)


def _pick_q_tile(n, cap=512):
    """Largest 8-multiple divisor of n that is <= cap (n itself if n <= cap)."""
    if n <= cap:
        return n
    t = cap - cap % 8
    while t >= 8:
        if n % t == 0:
            return t
        t -= 8
    return n


def _pick_kv_tile(n, cap=512):
    """Largest 128-multiple divisor of n that is <= cap (lane dim of bias)."""
    if n <= cap:
        return n
    t = cap - cap % 128
    while t >= 128:
        if n % t == 0:
            return t
        t -= 128
    return n


def attention(qkv, rel_bias, scale, *, mxu_dtype=jnp.float32):
    """qkv: (B, N, 3, H, hd); rel_bias: (H, N, N) f32 -> (B, N, H*hd)."""
    B, N, three, H, hd = qkv.shape
    assert three == 3
    C = H * hd
    tq = _pick_q_tile(N)
    tk = _pick_kv_tile(N)
    grid = (B, N // tq, N // tk)   # kv reduction innermost ("arbitrary")

    kern = functools.partial(_flash_attention_kernel, scale=scale,
                             mxu_dtype=mxu_dtype)

    # q/k/v all index into the SAME (B, N, 3, H, hd) buffer via the '3' axis.
    q_spec = pl.BlockSpec((None, tq, None, H, hd), lambda b, qi, kv: (b, qi, 0, 0, 0))
    k_spec = pl.BlockSpec((None, tk, None, H, hd), lambda b, qi, kv: (b, kv, 1, 0, 0))
    v_spec = pl.BlockSpec((None, tk, None, H, hd), lambda b, qi, kv: (b, kv, 2, 0, 0))
    bias_spec = pl.BlockSpec((H, tq, tk), lambda b, qi, kv: (0, qi, kv))
    out_spec = pl.BlockSpec((None, tq, C), lambda b, qi, kv: (b, qi, 0))

    return pl.pallas_call(
        kern,
        out_shape=jax.ShapeDtypeStruct((B, N, C), qkv.dtype),
        grid_spec=pltpu.PrefetchScalarGridSpec(
            num_scalar_prefetch=0,
            grid=grid,
            in_specs=[q_spec, k_spec, v_spec, bias_spec],
            out_specs=out_spec,
            scratch_shapes=[
                pltpu.VMEM((H, tq, 1), jnp.float32),    # running max m
                pltpu.VMEM((H, tq, 1), jnp.float32),    # running denom l
                pltpu.VMEM((H, tq, hd), jnp.float32),   # output accumulator
            ]),
        compiler_params=pltpu.CompilerParams(
            dimension_semantics=("parallel", "parallel", "arbitrary"),
            vmem_limit_bytes=VMEM_LIMIT_BYTES),
    )(qkv, qkv, qkv, rel_bias)


# ------------------------------ Module glue -------------------------------- #

def build_relative_index(max_dist):
    # Mirrors RelativeAttention._build_relative_index (M*M x M*M int index).
    coords = jnp.stack(
        jnp.meshgrid(jnp.arange(max_dist), jnp.arange(max_dist), indexing="ij"),
        axis=0)                                   # (2, M, M)
    coords_flat = coords.reshape(2, -1)           # (2, M*M)
    rel = coords_flat[:, :, None] - coords_flat[:, None, :]  # (2, M*M, M*M)
    rel = jnp.transpose(rel, (1, 2, 0)) + (max_dist - 1)
    return rel[:, :, 0] * (2 * max_dist - 1) + rel[:, :, 1]  # (M*M, M*M)


def relative_attention_forward(x, params, num_heads, relative_index,
                               mxu_dtype=jnp.float32):
    B, N, C = x.shape
    assert C % num_heads == 0
    head_dim = C // num_heads
    scale = head_dim ** (-0.5)

    # qkv projection (no bias) — bias-free Pallas matmul, no zero-bias DMA.
    qkv = linear(x.reshape(B * N, C), params["w_qkv"], None, mxu_dtype=mxu_dtype)
    # Row-major reshape only (no HBM transpose): (B, N, 3, H, hd).
    qkv = qkv.reshape(B, N, 3, num_heads, head_dim)

    # Relative position bias gather — plain JAX glue (small table lookup).
    # TODO(synk): the rel_table gather could be moved in-kernel via scalar-prefetch DMA.
    assert N <= relative_index.shape[0]
    idx = relative_index[:N, :N].reshape(-1)
    rel_bias = params["rel_table"][idx].reshape(N, N, num_heads)
    rel_bias = jnp.transpose(rel_bias, (2, 0, 1)).astype(jnp.float32)  # (H, N, N)

    # Flash attention — writes (B, N, C) directly, no output transpose needed.
    out = attention(qkv, rel_bias, scale, mxu_dtype=mxu_dtype)          # (B, N, C)

    # Output projection (with bias) — Pallas matmul.
    y = linear(out.reshape(B * N, C), params["w_proj"], params["b_proj"],
               mxu_dtype=mxu_dtype)
    return y.reshape(B, N, C)


def reference_forward(x, params, num_heads, relative_index):
    B, N, C = x.shape
    hd = C // num_heads
    scale = hd ** (-0.5)
    qkv = (x.reshape(B * N, C) @ params["w_qkv"]).reshape(B, N, 3, num_heads, hd)
    qkv = jnp.transpose(qkv, (2, 0, 3, 1, 4))
    q, k, v = qkv[0], qkv[1], qkv[2]
    attn = jnp.einsum("bhqd,bhkd->bhqk", q, k) * scale
    idx = relative_index[:N, :N].reshape(-1)
    bias = jnp.transpose(params["rel_table"][idx].reshape(N, N, num_heads), (2, 0, 1))
    attn = attn + bias[None]
    attn = jax.nn.softmax(attn, axis=-1)
    out = jnp.einsum("bhqk,bhkd->bhqd", attn, v)
    out = jnp.transpose(out, (0, 2, 1, 3)).reshape(B * N, C)
    return (out @ params["w_proj"] + params["b_proj"]).reshape(B, N, C)


# --------------------------------- Main ------------------------------------ #

if __name__ == "__main__":
    B, N, dim, num_heads = 2, 16, 32, 4
    max_rel_distance = 8  # N must be <= max_rel_distance**2

    key = jax.random.PRNGKey(0)
    k_x, k_qkv, k_proj, k_pb, k_tab = jax.random.split(key, 5)

    x = jax.random.normal(k_x, (B, N, dim), dtype=jnp.float32)

    # Deterministic synthetic parameters (PyTorch inits the bias table to zeros;
    # small randoms so the relative-bias path is actually exercised).
    params = {
        "w_qkv": jax.random.normal(k_qkv, (dim, 3 * dim), jnp.float32) * 0.05,
        "w_proj": jax.random.normal(k_proj, (dim, dim), jnp.float32) * 0.05,
        "b_proj": jax.random.normal(k_pb, (dim,), jnp.float32) * 0.05,
        "rel_table": jax.random.normal(
            k_tab, ((2 * max_rel_distance - 1) ** 2, num_heads), jnp.float32) * 0.02,
    }

    relative_index = build_relative_index(max_rel_distance)
    y_ref = reference_forward(x, params, num_heads, relative_index)

    # f32 MXU operands — exact path, tight tolerance.
    y = relative_attention_forward(x, params, num_heads, relative_index)
    y = jax.block_until_ready(y)
    assert y.shape == (B, N, dim)
    assert jnp.allclose(y, y_ref, atol=1e-4, rtol=1e-4), "f32 mismatch vs reference"

    # bf16 MXU operands (f32 accumulation, f32 softmax math) — looser tolerance.
    y_bf16 = relative_attention_forward(x, params, num_heads, relative_index,
                                        mxu_dtype=jnp.bfloat16)
    y_bf16 = jax.block_until_ready(y_bf16)
    assert jnp.allclose(y_bf16, y_ref, atol=3e-2, rtol=3e-2), "bf16 mismatch vs reference"

    print("KERNEL_OK")
</pallas_src>

<mosaic_0001>
module attributes {stable_mosaic.version = 11 : i64} {
  func.func @_matmul_kernel(%arg0: i32, %arg1: memref<32x32xf32, #tpu.memory_space<vmem>>, %arg2: memref<32x96xf32, #tpu.memory_space<vmem>>, %arg3: memref<32x96xf32, #tpu.memory_space<vmem>>) attributes {dimension_semantics = [#tpu.dimension_semantics<parallel>], iteration_bounds = array<i64: 1>, scalar_prefetch = 0 : i64, scratch_operands = 0 : i64, tpu.core_type = #tpu.core_type<tc>, window_params = [{transform_indices = @transform_0, window_bounds = array<i64: 32, 32>}, {pipeline_mode = #tpu.pipeline_mode<synchronous>, transform_indices = @transform_1, window_bounds = array<i64: 32, 96>}, {transform_indices = @transform_2, window_bounds = array<i64: 32, 96>}]} {
    %c0 = arith.constant 0 : index
    %c0_0 = arith.constant 0 : index
    %0 = vector.load %arg1[%c0, %c0_0] : memref<32x32xf32, #tpu.memory_space<vmem>>, vector<32x32xf32>
    %c0_1 = arith.constant 0 : index
    %c0_2 = arith.constant 0 : index
    %1 = vector.load %arg2[%c0_1, %c0_2] : memref<32x96xf32, #tpu.memory_space<vmem>>, vector<32x96xf32>
    %cst = arith.constant dense<0.000000e+00> : vector<32x96xf32>
    %2 = tpu.matmul %0, %1, %cst {dimension_numbers = #tpu.dot_dimension_numbers<[1], [0], [0], [1], [0, 0, 1, 1], [], []>} : vector<32x32xf32>, vector<32x96xf32>, vector<32x96xf32> -> vector<32x96xf32>
    %c0_3 = arith.constant 0 : index
    %c0_4 = arith.constant 0 : index
    %3 = vector.load %arg3[%c0_3, %c0_4] : memref<32x96xf32, #tpu.memory_space<vmem>>, vector<32x96xf32>
    tpu.vector_store %arg3[%c0_3, %c0_4], %2 {strides = array<i32>} : memref<32x96xf32, #tpu.memory_space<vmem>>, vector<32x96xf32>,
    return
  }
  func.func @transform_0(%arg0: i32) -> (i32, i32) {
    %c0_i32 = arith.constant 0 : i32
    %c0_i32_0 = arith.constant 0 : i32
    return %arg0, %c0_i32 : i32, i32
  }
  func.func @transform_1(%arg0: i32) -> (i32, i32) {
    %c0_i32 = arith.constant 0 : i32
    %c0_i32_0 = arith.constant 0 : i32
    %c0_i32_1 = arith.constant 0 : i32
    return %c0_i32, %c0_i32_0 : i32, i32
  }
  func.func @transform_2(%arg0: i32) -> (i32, i32) {
    %c0_i32 = arith.constant 0 : i32
    %c0_i32_0 = arith.constant 0 : i32
    return %arg0, %c0_i32 : i32, i32
  }
}

</mosaic_0001>

<bundles_post_ra>
// kernel: tpu_custom_call.1
= control target key start
LH: loop header
LB: loop body
LE: loop exit
PB: predicated region body
PF: predicated region fallthrough
CT: control target
= control target key end

     0   :  { %7 = vsyncpa [#allocation3], 0  ;;  %s353_s0 = inlined_call_operand.hbm [shape: f32[32,32], index: 0, kind: input, shape index: {}]   ;;  %s354_s1 = inlined_call_operand.hbm [shape: f32[32,96], index: 1, kind: input, shape index: {}]   ;;  %s355_s2 = inlined_call_operand.hbm [shape: f32[32,96], index: 2, kind: output, shape index: {}]  }
   0x1   :  { %8 = vsyncpa [#allocation6], 0 }
   0x2   :  { %9 = vsyncpa [#allocation4], 0  ;;  %s284_s9 = smov [#allocation2]   ;;  %s212_s13 = scalar_lea.hbm %s353_s0, 512 }
   0x3   :  { %s15_s10 = sshll.u32 %s284_s9, 4  ;;  %p213_p0 = scmp.ne.s32.totalorder %s353_s0, %s212_s13  ;;  %s16_s10 = int_to_ptr.vmem [resolvable:$true] %s15_s10 }
   0x4   :  { %p216_p1 = scmp.lt.u32.totalorder %s212_s13, %s353_s0 }
   0x6   :  { %p218_p2 = pnand %p216_p1, %p213_p0 }
   0x8   :  { %221 = shalt.err (!%p218_p2)
}
   0x9   :  { %s222_s18 = scalar_lea.vmem %s16_s10, 512  ;;  %p227_p4 = scmp.lt.s32.totalorder %s16_s10, %s16_s10 }
   0xa   :  { %p223_p3 = scmp.ne.s32.totalorder %s16_s10, %s222_s18  ;;  %p228_p5 = scmp.lt.s32.totalorder %s222_s18, %s222_s18 }
   0xc   :  { %p229_p6 = por %p228_p5, %p227_p4 }
   0xe   :  { %p230_p7 = pnand %p229_p6, %p223_p3 }
  0x10   :  { %233 = shalt.err (!%p230_p7)
}
  0x11   :  { %s285_s19 = smov 128   ;;  %s286_s20 = smov 8  }
  0x12   :  { %21 = dma.hbm_to_vmem [thread:$0]  %s353_s0, 512, %s16_s10, [#allocation3], %s285_s19, %s285_s19, %s286_s20  }
  0x13   :  { %s287_s23 = smov [#allocation5]   ;;  %s234_s27 = scalar_lea.hbm %s354_s1, 512 }
  0x14   :  { %s27_s24 = sshll.u32 %s287_s23, 4  ;;  %p235_p8 = scmp.ne.s32.totalorder %s354_s1, %s234_s27  ;;  %s28_s24 = int_to_ptr.vmem [resolvable:$true] %s27_s24 }
  0x15   :  { %p238_p9 = scmp.lt.u32.totalorder %s234_s27, %s354_s1 }
  0x17   :  { %p240_p10 = pnand %p238_p9, %p235_p8 }
  0x19   :  { %243 = shalt.err (!%p240_p10)
}
  0x1a   :  { %s244_s4 = scalar_lea.vmem %s28_s24, 512  ;;  %p249_p12 = scmp.lt.s32.totalorder %s28_s24, %s28_s24 }
  0x1b   :  { %p245_p11 = scmp.ne.s32.totalorder %s28_s24, %s244_s4  ;;  %p250_p13 = scmp.lt.s32.totalorder %s244_s4, %s244_s4 }
  0x1d   :  { %p251_p0 = por %p250_p13, %p249_p12 }
  0x1f   :  { %p252_p1 = pnand %p251_p0, %p245_p11 }
  0x21   :  { %255 = shalt.err (!%p252_p1)
}
  0x22   :  { %33 = dma.hbm_to_vmem [thread:$0]  %s354_s1, 512, %s28_s24, [#allocation6], %s285_s19, %s285_s19, %s286_s20  }
  0x23   :  { %278 = dma.done.wait [#allocation3], 512  }
  0x24   :  { %279 = vsyncadd [#allocation3], 4294966784 }
  0x25   :  { %280 = dma.done.wait [#allocation6], 512  }
  0x26   :  { %281 = vsyncadd [#allocation6], 4294966784  ;;  %vm48_vm0 = vcmask 261120   ;;  %v44_v0 = vld [vmem:[#allocation5] sm:$0xff]  ;;  %v45_v1 = vld [vmem:[#allocation5 + $0x8] sm:$0xff]  ;;  %s288_s1 = smov [#allocation7]  }
  0x27   :  { %v46_v2 = vld [vmem:[#allocation5 + $0x10] sm:$0xff]  ;;  %v195_v3 = vpack.c.bf16 %v45_v1, %v44_v0  ;;  %v47_v4 = vld [vmem:[#allocation5 + $0x18] sm:$0xff]  ;;  %v40_v5 = vld [vmem:[#allocation2] sm:$0xff]  ;;  %s156_s6 = sshll.u32 %s288_s1, 4  ;;  %vm146_vm1 = vcmask 785408   ;;  %s157_s6 = int_to_ptr.vmem [resolvable:$true] %s156_s6 }
  0x28   :  { %v42_v6 = vld [vmem:[#allocation2 + $0x10] sm:$0xff]  ;;  %v199_v7 = vpack.c.bf16 %v47_v4, %v46_v2  ;;  %189 = vmatprep.mubr.msk.f32.mxu0 %vm48_vm0, %v40_v5  ;;  %v41_v8 = vld [vmem:[#allocation2 + $0x8] sm:$0xff]  ;;  %v43_v9 = vld [vmem:[#allocation2 + $0x18] sm:$0xff]  ;;  %s256_s7 = scalar_lea.vmem %s157_s6, 512  ;;  %p261_p3 = scmp.lt.s32.totalorder %s157_s6, %s157_s6 }
  0x29   :  { %192 = vmatprep.mubr.msk.f32.mxu1 %vm48_vm0, %v42_v6  ;;  %196 = vmatprep.subr.bf16.mxu0 %v195_v3  ;;  %p257_p2 = scmp.ne.s32.totalorder %s157_s6, %s256_s7  ;;  %p262_p4 = scmp.lt.s32.totalorder %s256_s7, %s256_s7 }
  0x2a   :  { %203 = vmatprep.subr.bf16.mxu1 %v195_v3  ;;  %198 = vmatpush3.bf16.msra.mxu0 %v195_v3 }
  0x2b   :  { %205 = vmatpush3.bf16.msra.mxu1 %v195_v3  ;;  %200 = vmatprep.subr.bf16.mxu0 %v199_v7  ;;  %p263_p5 = por %p262_p4, %p261_p3 }
  0x2c   :  { %204 = vmatprep.subr.bf16.mxu1 %v199_v7 }
  0x2d   :  { %p264_p6 = pnand %p263_p5, %p257_p2 }
  0x2e   :  { %202 = vmatpush3.bf16.msra.mxu0 %v199_v7 }
  0x2f   :  { %206 = vmatpush3.bf16.msra.mxu1 %v199_v7 }
  0x31   :  { %190 = vmatmul.mubr.msk.f32.vlgmr.msra.gmra.mrb[0].mxu0 %vm48_vm0, %v41_v8 }
  0x32   :  { %193 = vmatmul.mubr.msk.f32.vlgmr.msra.gmra.mrb[0].mxu1 %vm48_vm0, %v43_v9 }
 0x104   :  { %v191_v10 = vpop.f32.mrb[0].mxu0 }
 0x105   :  { %v194_v11 = vpop.f32.mrb[0].mxu1  ;;  %148 = vst.msk [vmem:[#allocation7 + $0x8] sm:$0xff] %vm146_vm1, %v191_v10  ;;  %v127_v12 = vpop.f32.mrb[1].mxu0 }
 0x106   :  { %150 = vst.msk [vmem:[#allocation7 + $0x18] sm:$0xff] %vm146_vm1, %v194_v11  ;;  %v137_v13 = vpop.f32.mrb[1].mxu1  ;;  %147 = vst.msk [vmem:[#allocation7] sm:$0xff] %vm146_vm1, %v127_v12 }
 0x107   :  { %149 = vst.msk [vmem:[#allocation7 + $0x10] sm:$0xff] %vm146_vm1, %v137_v13 }
 0x108   :  { %267 = shalt.err (!%p264_p6)
}
 0x109   :  { %s268_s10 = scalar_lea.hbm %s355_s2, 512 }
 0x10a   :  { %p269_p7 = scmp.ne.s32.totalorder %s355_s2, %s268_s10  ;;  %p272_p8 = scmp.lt.u32.totalorder %s268_s10, %s355_s2 }
 0x10c   :  { %p274_p9 = pnand %p272_p8, %p269_p7 }
 0x10e   :  { %277 = shalt.err (!%p274_p9)
}
 0x10f   :  { %162 = dma.vmem_to_hbm [thread:$0]  %s157_s6, 512, %s355_s2, [#allocation4], %s285_s19, %s285_s19, %s286_s20  }
 0x110   :  { %282 = dma.done.wait [#allocation4], 512  }
 0x111   :  { %283 = vsyncadd [#allocation4], 4294966784 }
 0x112   :  { %166 = vsyncpa [#allocation3], 1 }
 0x113   :  { %167 = vsyncpa [#allocation6], 1 }
 0x114   :  { %168 = vsyncpa [#allocation4], 1 }

</bundles_post_ra>
